<compile_context>
chip_gen: v7x
topology: tpu7x:2x2x1
jax: 0.10.0
libtpu: 0.0.40
codegen_flags: <defaults>
</compile_context>

<pallas_src>
import math
from functools import partial

import jax
import jax.numpy as jnp
from jax.experimental import pallas as pl
from jax.experimental.pallas import tpu as pltpu


_TILE_BYTES = 2 * 1024 * 1024     # per-buffer tile budget (in + out double-buffered)
_VMEM_LIMIT = 32 * 1024 * 1024    # safe on v5e/v6e/v7x


# ---------------- kernel: tiled per-sample broadcast multiply ----------------

def _drop_path_kernel(inv_keep_prob, keep_ref, x_ref, o_ref):
    # keep_ref: (B,) int32 in SMEM (scalar prefetch); x_ref/o_ref: (1, tr, D) VMEM tiles.
    b = pl.program_id(0)
    scale = jnp.where(keep_ref[b] != 0, inv_keep_prob, 0.0)   # weak f32 scalar
    o_ref[...] = (x_ref[...] * scale).astype(o_ref.dtype)


# ---------------- tiling helpers ----------------

def _fold_lanes(rows, d):
    # Make the lane dim a multiple of 128 when D is small by folding row groups.
    if d % 128 == 0:
        return rows, d
    k = 128 // math.gcd(d, 128)
    if k > 1 and rows % k == 0 and d * k <= 8192:
        return rows // k, d * k
    return rows, d


def _pick_row_tile(rows, d, itemsize):
    sub = {4: 8, 2: 16, 1: 32}.get(itemsize, 8)
    cap_rows = max(sub, _TILE_BYTES // max(1, d * itemsize))
    if rows <= cap_rows:
        return rows                             # full-dim block: always legal
    tr = max(sub, (cap_rows // sub) * sub)
    t = tr
    while t >= max(sub, tr // 2):               # prefer an even divisor (no ragged tail)
        if rows % t == 0:
            return t
        t -= sub
    return tr                                   # ragged tail is masked by Pallas


# ---------------- wrapper ----------------

def drop_path(x, drop_prob=0.0, *, training=False, key=None, seed=0):
    """Stochastic depth: per-sample Bernoulli(1 - drop_prob) mask scaled by 1/keep_prob."""
    if drop_prob == 0.0 or not training:
        return x
    keep_prob = 1.0 - float(drop_prob)
    inv_kp = (1.0 / keep_prob) if keep_prob > 0.0 else 0.0

    orig_shape = x.shape
    batch = orig_shape[0]

    # TODO(synk): per-sample Bernoulli is drawn with jax.random outside the kernel;
    # pltpu.prng_* has no CPU/interpret lowering and the draw is only O(batch).
    if key is None:
        key = jax.random.PRNGKey(seed)
    keep = jax.random.bernoulli(key, keep_prob, (batch,)).astype(jnp.int32)

    if x.ndim >= 2:
        d = orig_shape[-1]
        rows = 1
        for s in orig_shape[1:-1]:
            rows *= s
    else:
        rows, d = 1, 1
    rows, d = _fold_lanes(rows, d)
    x3 = x.reshape(batch, rows, d)

    tr = _pick_row_tile(rows, d, x.dtype.itemsize)
    grid = (batch, pl.cdiv(rows, tr))

    out = pl.pallas_call(
        partial(_drop_path_kernel, inv_kp),
        out_shape=jax.ShapeDtypeStruct((batch, rows, d), x.dtype),
        grid_spec=pltpu.PrefetchScalarGridSpec(
            num_scalar_prefetch=1,              # keep mask lands in SMEM
            grid=grid,
            in_specs=[pl.BlockSpec((1, tr, d), lambda b, r, keep_ref: (b, r, 0))],
            out_specs=pl.BlockSpec((1, tr, d), lambda b, r, keep_ref: (b, r, 0)),
        ),
        compiler_params=pltpu.CompilerParams(
            dimension_semantics=("parallel", "parallel"),   # independent tiles; v7x megacore
            vmem_limit_bytes=_VMEM_LIMIT,
        ),
    )(keep, x3)

    return out.reshape(orig_shape)


class DropPath:
    """Drop paths (stochastic depth) per sample, mirroring the torch module."""

    def __init__(self, drop_prob=None):
        self.drop_prob = float(drop_prob) if drop_prob is not None else 0.0
        self.training = True     # nn.Module default mode

    def __call__(self, x, *, key=None, seed=0):
        return drop_path(x, self.drop_prob, training=self.training, key=key, seed=seed)


if __name__ == "__main__":
    key = jax.random.PRNGKey(0)
    B, N, D = 2, 8, 32           # batch, tokens, hidden dim
    drop_prob = 0.25
    keep_prob = 1.0 - drop_prob

    x = jax.random.normal(key, (B, N, D), dtype=jnp.float32)

    m = DropPath(drop_prob)      # training mode by default
    y = m(x, seed=0)
    jax.block_until_ready(y)

    # Each sample must be either fully dropped (zeros) or scaled by exactly 1/keep_prob.
    for b in range(B):
        kept = bool(jnp.allclose(y[b], x[b] / keep_prob, atol=1e-5, rtol=1e-5))
        dropped = bool(jnp.allclose(y[b], jnp.zeros_like(y[b]), atol=1e-6))
        assert kept or dropped, f"sample {b} is neither kept nor dropped"

    # Eval mode and drop_prob == 0 are exact identities (PyTorch semantics).
    m.training = False
    assert jnp.allclose(m(x), x)
    assert jnp.allclose(drop_path(x, 0.0, training=True), x)

    print("KERNEL_OK")
</pallas_src>

<mosaic_0001>
module attributes {stable_mosaic.version = 11 : i64} {
  func.func @_drop_path_kernel(%arg0: i32, %arg1: i32, %arg2: memref<2xi32, #tpu.memory_space<smem>>, %arg3: memref<1x2x128xf32, #tpu.memory_space<vmem>>, %arg4: memref<1x2x128xf32, #tpu.memory_space<vmem>>) attributes {dimension_semantics = [#tpu.dimension_semantics<parallel>, #tpu.dimension_semantics<parallel>], iteration_bounds = array<i64: 2, 1>, scalar_prefetch = 1 : i64, scratch_operands = 0 : i64, tpu.core_type = #tpu.core_type<tc>, window_params = [{transform_indices = @transform_0, window_bounds = array<i64: 1, 2, 128>}, {transform_indices = @transform_1, window_bounds = array<i64: 1, 2, 128>}]} {
    %0 = arith.index_cast %arg0 : i32 to index
    %1 = memref.load %arg2[%0] : memref<2xi32, #tpu.memory_space<smem>>
    %c0_i32 = arith.constant 0 : i32
    %2 = arith.cmpi ne, %1, %c0_i32 : i32
    %cst = arith.constant 1.33333337 : f32
    %cst_0 = arith.constant 0.000000e+00 : f32
    %3 = arith.select %2, %cst, %cst_0 : f32
    %c0 = arith.constant 0 : index
    %c0_1 = arith.constant 0 : index
    %c0_2 = arith.constant 0 : index
    %4 = vector.load %arg3[%c0, %c0_1, %c0_2] : memref<1x2x128xf32, #tpu.memory_space<vmem>>, vector<1x2x128xf32>
    %5 = vector.broadcast %3 : f32 to vector<1x2x128xf32>
    %6 = arith.mulf %4, %5 : vector<1x2x128xf32>
    %c0_3 = arith.constant 0 : index
    %c0_4 = arith.constant 0 : index
    %c0_5 = arith.constant 0 : index
    %7 = vector.load %arg4[%c0_3, %c0_4, %c0_5] : memref<1x2x128xf32, #tpu.memory_space<vmem>>, vector<1x2x128xf32>
    tpu.vector_store %arg4[%c0_3, %c0_4, %c0_5], %6 {strides = array<i32>} : memref<1x2x128xf32, #tpu.memory_space<vmem>>, vector<1x2x128xf32>,
    return
  }
  func.func @transform_0(%arg0: i32, %arg1: i32, %arg2: memref<2xi32, #tpu.memory_space<smem>>) -> (i32, i32, i32) {
    %c0_i32 = arith.constant 0 : i32
    %c0_i32_0 = arith.constant 0 : i32
    return %arg0, %arg1, %c0_i32 : i32, i32, i32
  }
  func.func @transform_1(%arg0: i32, %arg1: i32, %arg2: memref<2xi32, #tpu.memory_space<smem>>) -> (i32, i32, i32) {
    %c0_i32 = arith.constant 0 : i32
    %c0_i32_0 = arith.constant 0 : i32
    return %arg0, %arg1, %c0_i32 : i32, i32, i32
  }
}

</mosaic_0001>

<bundles_post_ra>
// kernel: tpu_custom_call.1
= control target key start
LH: loop header
LB: loop body
LE: loop exit
PB: predicated region body
PF: predicated region fallthrough
CT: control target
= control target key end

     0   :  { %s661_s0 = inlined_call_operand.hbm [shape: s32[2], index: 0, kind: input, shape index: {}]   ;;  %s662_s1 = inlined_call_operand.hbm [shape: f32[2,2,128], index: 1, kind: input, shape index: {}]   ;;  %s663_s2 = inlined_call_operand.hbm [shape: f32[2,2,128], index: 2, kind: output, shape index: {}]  }
   0x1   :  { %s332_s11 = scalar_lea.hbm %s661_s0, 16 }
   0x2   :  { %p333_p0 = scmp.ne.s32.totalorder %s661_s0, %s332_s11  ;;  %p336_p1 = scmp.lt.u32.totalorder %s332_s11, %s661_s0 }
   0x4   :  { %p338_p2 = pnand %p336_p1, %p333_p0 }
   0x6   :  { %341 = shalt.err (!%p338_p2)  }
   0x7   :  { %s458_s16 = smov [#allocation3]  }
   0x8   :  { %8 = dma.hbm_to_smem %s661_s0, 16, %s458_s16, [#allocation2] }
   0x9   :  { %424 = dma.done.wait [#allocation2], 16 }
   0xa   :  { %425 = vsyncadd [#allocation2], 4294967280 }
   0xb   :  { %10 = sfence }
   0xc   :  { %11 = vsyncpa [#allocation5], 0 }
   0xd   :  { %13 = vsyncpa [#allocation5 + $0x1], 0 }
   0xe   :  { %14 = vsyncpa [#allocation6], 0 }
   0xf   :  { %16 = vsyncpa [#allocation6 + $0x1], 0  ;;  %s488_s19 = smov 0   ;;  %s490_s20 = smov 0  }
  0x10   :  { %s492_s21 = smov 0   ;;  %s494_s22 = smov 0  }
  0x11   :  { %s496_s23 = smov 0   ;;  %s498_s24 = smov 0  }
  0x12 LB: > { %s256_s0 = sadd.s32 4294967295, %s456_s24   ;;  %s257_s25 = sadd.s32 4294967294, %s456_s24   ;;  %s456_s24 = sphi %s498_s24, %s22_s24   ;;  %s452_s23 = sphi %s496_s23, %s679_s23   ;;  %s448_s22 = sphi %s494_s22, %s678_s22   ;;  %s444_s21 = sphi %s492_s21, %s677_s21   ;;  %s440_s20 = sphi %s490_s20, %s676_s20   ;;  %s436_s19 = sphi %s488_s19, %s675_s19  }
  0x13   : > { %s34_s26 = sadd.s32 1, %s452_s23  ;;  %s43_s27 = sadd.s32 1, %s444_s21 }
  0x14   : > { %p36_p3 = scmp.ge.s32.totalorder %s34_s26, 2  ;;  %p50_p4 = scmp.ne.s32.totalorder %s444_s21, %s440_s20 }
  0x15   : > { %p51_p5 = scmp.eq.s32.totalorder %s456_s24, 0  ;;  %p56_p6 = scmp.ne.s32.totalorder %s440_s20, %s436_s19 }
  0x16   : > { %s681_s26 = smov (%p36_p3, %s34_s26), 0  ;;  %p57_p8 = scmp.eq.s32.totalorder %s256_s0, 0 }
  0x17   : > { %p529_p7 = por %p51_p5, %p50_p4  ;;  %s38_s29 = ssub.s32 %s452_s23, %s681_s26 }
  0x18   : > { %p82_p9 = scmp.eq.s32.totalorder %s256_s0, 1  ;;  %p41_p10 = scmp.eq.s32.totalorder %s38_s29, 0 }
  0x19   : > { %p535_p11 = por %p57_p8, %p56_p6  ;;  %p88_p13 = scmp.eq.s32.totalorder %s257_s25, 1 }
  0x1a   : > { %p539_p12 = por %p82_p9, %p50_p4  ;;  %p281_p2 = scmp.lt.s32.totalorder %s456_s24, 2 }
  0x1b   : > { %s544_s4 = scalar_select %p41_p10, %s444_s21, %s43_s27  }
  0x1c   : > { %s667_s3 = scalar_select %p539_p12, 1, 0 }
  0x1d   : > { %p546_p0 = por %p88_p13, %p56_p6  ;;  %s108_s6 = sand.u32 1, %s444_s21  }
  0x1e   : > { %s260_s7 = sshll.u32 %s108_s6, 1  ;;  %s261_s8 = sshll.u32 %s452_s23, 5 }
  0x1f   : > { %s668_s5 = scalar_select %p546_p0, 1, 0 }
  0x20   : > { %s557_s11 = scalar_lea.hbm %s662_s1, %s261_s8  ;;  %s112_s12 = scalar_lea.vmem [#allocation4], %s260_s7 }
  0x21   : > { %s120_s13 = sshll.u32 %s112_s12, 4  ;;  %p563_p3 = pnand %p281_p2, %p529_p7  ;;  %s559_s13 = int_to_ptr.vmem [resolvable:$true] %s120_s13 }
  0x22   : > { %s109_s15 = scalar_lea.sflag [#allocation5], %s108_s6  ;;  %s342_s16 = scalar_lea.hbm %s557_s11, 32 }
  0x23   : > { %p343_p6 = scmp.ne.s32.totalorder %s557_s11, %s342_s16  ;;  %p344_p8 = pneg %p563_p3 }
  0x24   : > { %s347_s0 = scalar_lea.hbm %s662_s1, 64  ;;  %p348_p7 = scmp.lt.u32.totalorder %s557_s11, %s662_s1 }
  0x25   : > { %p345_p9 = pnand %p344_p8, %p343_p6  ;;  %p349_p13 = scmp.lt.u32.totalorder %s347_s0, %s342_s16 }
  0x26   : > { %p351_p1 = scmp.lt.u32.totalorder %s342_s16, %s557_s11 }
  0x27   : > { %p346_p10 = pneg %p345_p9  ;;  %p350_p2 = por %p349_p13, %p348_p7 }
  0x29   : > { %p352_p4 = por %p351_p1, %p350_p2 }
  0x2b   : > { %p353_p5 = pnand %p352_p4, %p346_p10 }
  0x2d   : > { %356 = shalt.err (!%p353_p5)
}
  0x2e   : > { %s357_s28 = scalar_lea.vmem %s559_s13, 32  ;;  %s459_s29 = smov [#allocation4]  }
  0x2f   : > { %p358_p6 = scmp.ne.s32.totalorder %s559_s13, %s357_s28  ;;  %s362_s6 = sshll.u32 %s459_s29, 4  ;;  %s363_s6 = int_to_ptr.vmem [resolvable:$false] %s362_s6 }
  0x30   : > { %s364_s7 = scalar_lea.vmem %s363_s6, 64  ;;  %p365_p12 = scmp.lt.s32.totalorder %s559_s13, %s363_s6 }
  0x31   : > { %p360_p9 = pnand %p358_p6, %p344_p8  ;;  %p366_p7 = scmp.lt.s32.totalorder %s364_s7, %s357_s28 }
  0x33   : > { %p361_p0 = pneg %p360_p9  ;;  %p367_p13 = por %p366_p7, %p365_p12 }
  0x35   : > { %p368_p1 = pnand %p367_p13, %p361_p0 }
  0x37   : > { %371 = shalt.err (!%p368_p1)
}
  0x38   : > { %276 = dma.hbm_to_vmem [thread:$0]  (!%p563_p3), %s557_s11, 32, %s559_s13, %s109_s15  }
  0x39   : > { %p670_p4 = scmp.lt.s32.totalorder %s456_s24, 3  ;;  %p671_p5 = scmp.ge.s32.totalorder %s456_s24, 1 }
  0x3b   : > { %p126_p8 = pnand %p671_p5, %p670_p4 }
  0x3c   : > { %s599_s8 = sand.u32 (!%p126_p8), 1, %s440_s20  }
  0x3d   : > { %129 = sbr.rel (%p126_p8) target bundleno = 97 (0x61), region = 24  ;;  %s263_s9 = sshll.u32 (!%p126_p8), %s599_s8, 1 }
  0x3e   : > { %s132_s10 = scalar_lea.sflag (!%p126_p8), [#allocation5], %s599_s8  ;;  %s135_s12 = scalar_lea.vmem (!%p126_p8), [#allocation4], %s263_s9 }
  0x44   : > { %427 = dma.done.wait (%p535_p11), %s132_s10, 32  }
  0x45   : > { %429 = vsyncadd (%p535_p11), %s132_s10, 4294967264  ;;  %s154_s11 = sld [smem:[#allocation3 + %s448_s22]]  ;;  %s153_s13 = scalar_lea.vmem [#allocation7], %s263_s9  ;;  %v157_v0 = vld [vmem:[%s135_s12] sm:$0x3] }
  0x46   : > { %s176_s14 = sshll.u32 %s153_s13, 4  ;;  %s266_s15 = sshll.u32 %s448_s22, 5  ;;  %s609_s14 = int_to_ptr.vmem [resolvable:$true] %s176_s14 }
  0x47   : > { %s614_s30 = scalar_lea.hbm %s663_s2, %s266_s15  ;;  %s162_s0 = scalar_lea.sflag [#allocation6], %s599_s8 }
  0x48   : > { %s372_s25 = scalar_lea.vmem %s609_s14, 32  ;;  %p672_p0 = scmp.ne.s32.totalorder %s667_s3, 0 }
  0x49   : > { %p373_p11 = scmp.ne.s32.totalorder %s609_s14, %s372_s25  ;;  %s460_s22 = smov [#allocation7]  }
  0x4a   : > { %s376_s27 = sshll.u32 %s460_s22, 4  ;;  %s377_s27 = int_to_ptr.vmem [resolvable:$false] %s376_s27 }
  0x4b   : > { %p155_p12 = scmp.ne.s32.totalorder %s154_s11, 0  ;;  %p374_p3 = pnand %p373_p11, %p672_p0 }
  0x4c   : > { %s378_s28 = scalar_lea.vmem %s377_s27, 64  ;;  %p379_p2 = scmp.lt.s32.totalorder %s609_s14, %s377_s27 }
  0x4d   : > { %s156_s16 = scalar_select %p155_p12, 1.3333334, 0.0 }
  0x4e   : > { %p375_p10 = pneg %p374_p3  ;;  %p380_p6 = scmp.lt.s32.totalorder %s378_s28, %s372_s25 }
  0x4f   : > { %v158_v1 = vstv %s156_s16 }
  0x50   : > { %v159_v2 = vmul.f32 %v158_v1, %v157_v0  ;;  %p381_p9 = por %p380_p6, %p379_p2 }
  0x52   : > { %160 = vst [vmem:[%s153_s13] sm:$0x3] %v159_v2  ;;  %p382_p7 = pnand %p381_p9, %p375_p10 }
  0x54   : > { %385 = shalt.err (!%p382_p7)
}
  0x55   : > { %s386_s29 = scalar_lea.hbm %s614_s30, 32  ;;  %s390_s8 = scalar_lea.hbm %s663_s2, 64 }
  0x56   : > { %p387_p13 = scmp.ne.s32.totalorder %s614_s30, %s386_s29  ;;  %p391_p5 = scmp.lt.u32.totalorder %s614_s30, %s663_s2 }
  0x57   : > { %p392_p8 = scmp.lt.u32.totalorder %s390_s8, %s386_s29  ;;  %p394_p11 = scmp.lt.u32.totalorder %s386_s29, %s614_s30 }
  0x58   : > { %p388_p1 = pnand %p387_p13, %p672_p0 }
  0x59   : > { %p393_p12 = por %p392_p8, %p391_p5 }
  0x5a   : > { %p389_p4 = pneg %p388_p1 }
  0x5b   : > { %p395_p3 = por %p394_p11, %p393_p12 }
  0x5d   : > { %p396_p10 = pnand %p395_p3, %p389_p4 }
  0x5f   : > { %399 = shalt.err (!%p396_p10)
}
  0x60   : > { %271 = dma.vmem_to_hbm [thread:$0]  (%p672_p0), %s609_s14, 32, %s614_s30, %s162_s0  }
  0x61 PF: > { %s188_s12 = sand.u32 1, %s436_s19   ;;  %p673_p2 = scmp.ne.s32.totalorder %s668_s5, 0 }
  0x62   : > { %p674_p6 = scmp.ge.s32.totalorder %s456_s24, 2  ;;  %s189_s11 = scalar_lea.sflag [#allocation6], %s188_s12 }
  0x64   : > { %p278_p9 = pnand %p674_p6, %p673_p2 }
  0x66   : > { %431 = dma.done.wait (!%p278_p9), %s189_s11, 32  }
  0x67   : > { %433 = vsyncadd (!%p278_p9), %s189_s11, 4294967264  ;;  %s22_s24 = sadd.s32 1, %s456_s24   ;;  %s675_s19 = smov %s440_s20 }
  0x68   : > { %p19_p7 = scmp.ge.s32.totalorder %s22_s24, 4   ;;  %s676_s20 = smov %s444_s21 }
  0x69   : > { %s677_s21 = smov %s544_s4  ;;  %s678_s22 = smov %s452_s23 }
  0x6a   : > { %s679_s23 = smov %s681_s26  ;;  %21 = sbr.rel (!%p19_p7) target bundleno = 18 (0x12), region = 69 }
  0x71   :  { %194 = vsyncpa [#allocation5], 1 }
  0x72   :  { %196 = vsyncpa [#allocation5 + $0x1], 1 }
  0x73   :  { %197 = vsyncpa [#allocation6], 1 }
  0x74   :  { %199 = vsyncpa [#allocation6 + $0x1], 1 }

</bundles_post_ra>
